<compile_context>
chip_gen: v7x
topology: tpu7x:2x2x1
jax: 0.10.0
libtpu: 0.0.40
codegen_flags: <defaults>
</compile_context>

<pallas_src>
import math

import jax
import jax.numpy as jnp
from jax.experimental import pallas as pl
from jax.experimental.pallas import tpu as pltpu


def _round_up(x, m):
    return ((x + m - 1) // m) * m


def _gelu_exact(x):
    # Matches PyTorch F.gelu default (erf-based, not tanh approximation).
    return 0.5 * x * (1.0 + jax.lax.erf(x * (1.0 / math.sqrt(2.0))))


# ----------------------------------------------------------------------------
# Kernels
# ----------------------------------------------------------------------------
def _fused_kernel(x_ref, w1_ref, b1_ref, w2_ref, b2_ref, o_ref):
    # x:(tm,in)  W1:(in,hid_p)  b1:(1,hid_p)  W2:(hid_p,out)  b2:(1,out)
    h = jnp.dot(x_ref[...], w1_ref[...], preferred_element_type=jnp.float32)
    h = _gelu_exact(h + b1_ref[...])                      # f32 bias + erf gelu
    y = jnp.dot(h.astype(w2_ref.dtype), w2_ref[...],
                preferred_element_type=jnp.float32)
    o_ref[...] = (y + b2_ref[...]).astype(o_ref.dtype)


def _hidden_tiled_kernel(x_ref, w1_ref, b1_ref, w2_ref, b2_ref, o_ref, acc_ref):
    # Grid = (row tiles, hidden chunks); hidden axis is the reduction.
    k = pl.program_id(1)

    @pl.when(k == 0)
    def _():
        acc_ref[...] = jnp.zeros_like(acc_ref)

    h = jnp.dot(x_ref[...], w1_ref[...], preferred_element_type=jnp.float32)
    h = _gelu_exact(h + b1_ref[...])
    acc_ref[...] += jnp.dot(h.astype(w2_ref.dtype), w2_ref[...],
                            preferred_element_type=jnp.float32)

    @pl.when(k == pl.num_programs(1) - 1)
    def _():
        o_ref[...] = (acc_ref[...] + b2_ref[...]).astype(o_ref.dtype)


# ----------------------------------------------------------------------------
# Wrapper
# ----------------------------------------------------------------------------
def _vmem_budget_bytes():
    cap = 64 * 2**20                       # conservative default (v7x per-TC)
    try:
        cap = int(pltpu.get_tpu_info().vmem_capacity_bytes)
    except Exception:
        pass
    return max(int(cap * 0.85), 32 * 2**20)


def prediction_forward(x, w1, b1, w2, b2, *, compute_dtype=jnp.bfloat16):
    """x: (B, L, in_dim) -> (B, L, out_dim). Fused fc1 + gelu + fc2."""
    B, L, in_dim = x.shape
    hidden = w1.shape[1]
    out_dim = w2.shape[1]
    M = B * L

    cd = jnp.dtype(compute_dtype)
    od = x.dtype

    def lanes(n):
        return _round_up(n, 128)

    def sub8(n):
        return _round_up(n, 8)

    hid_p = lanes(hidden)

    # --- pad only the weights' hidden dim (lane-dense intermediate); x and the
    #     output stay at their true channel widths (block dim == array dim). --
    w1_c = w1.astype(cd)
    b1_c = b1.astype(jnp.float32).reshape(1, hidden)
    w2_c = w2.astype(cd)
    if hid_p != hidden:
        w1_c = jnp.zeros((in_dim, hid_p), cd).at[:, :hidden].set(w1_c)
        b1_c = jnp.zeros((1, hid_p), jnp.float32).at[:, :hidden].set(b1_c)
        w2_c = jnp.zeros((hid_p, out_dim), cd).at[:hidden, :].set(w2_c)
    b2_c = b2.astype(jnp.float32).reshape(1, out_dim)

    # --- generation-aware VMEM budget and tile selection ----------------------
    budget = _vmem_budget_bytes()

    def fp_single(tm, wbuf):
        return (2 * tm * lanes(in_dim) * cd.itemsize          # x tiles
                + 2 * tm * lanes(out_dim) * od.itemsize        # out tiles
                + wbuf * (sub8(in_dim) * hid_p
                          + sub8(hid_p) * lanes(out_dim)) * cd.itemsize
                + wbuf * 8 * (hid_p + lanes(out_dim)) * 4      # biases
                + tm * hid_p * 4                               # f32 h
                + tm * lanes(out_dim) * 4)                     # f32 y

    def fp_hidden(tm, th):
        return (2 * tm * lanes(in_dim) * cd.itemsize
                + 2 * tm * lanes(out_dim) * od.itemsize
                + 2 * (sub8(in_dim) * th + sub8(th) * lanes(out_dim)) * cd.itemsize
                + 2 * 8 * th * 4 + 8 * lanes(out_dim) * 4
                + tm * lanes(out_dim) * 4                      # f32 accumulator
                + tm * th * 4)                                 # f32 h chunk

    m_aligned = sub8(M)
    tm_candidates = [t for t in (1024, 512, 256, 128) if t <= m_aligned] or [m_aligned]

    tm = None
    th = None
    for t in tm_candidates:
        if fp_single(t, wbuf=1) <= budget:
            tm = t
            break

    use_hidden_tiling = tm is None
    if use_hidden_tiling:
        th_candidates = [t for t in (1024, 512, 256, 128) if hid_p % t == 0]
        tm, th = tm_candidates[-1], th_candidates[-1]
        done = False
        for t in tm_candidates:
            for tc in th_candidates:
                if fp_hidden(t, tc) <= budget:
                    tm, th = t, tc
                    done = True
                    break
            if done:
                break

    M_p = _round_up(M, tm)

    # --- x: reshape + cast only; pad rows only when tm does not divide M ------
    x2 = x.reshape(M, in_dim).astype(cd)
    if M_p != M:
        x2 = jnp.pad(x2, ((0, M_p - M), (0, 0)))

    cost = pl.CostEstimate(
        flops=2 * M_p * (in_dim * hid_p + hid_p * out_dim),
        transcendentals=M_p * hid_p,
        bytes_accessed=int(M_p * in_dim * cd.itemsize
                           + (w1_c.size + w2_c.size) * cd.itemsize
                           + (b1_c.size + b2_c.size) * 4
                           + M_p * out_dim * od.itemsize),
    )

    vmem_limit = int(budget)

    def _call(single_buffer_weights):
        kw = dict(pipeline_mode=pl.Buffered(1)) if single_buffer_weights else {}
        if not use_hidden_tiling:
            grid = (M_p // tm,)
            kernel = _fused_kernel
            in_specs = [
                pl.BlockSpec((tm, in_dim), lambda i: (i, 0)),            # x tile
                pl.BlockSpec((in_dim, hid_p), lambda i: (0, 0), **kw),   # W1 resident
                pl.BlockSpec((1, hid_p), lambda i: (0, 0), **kw),        # b1
                pl.BlockSpec((hid_p, out_dim), lambda i: (0, 0), **kw),  # W2 resident
                pl.BlockSpec((1, out_dim), lambda i: (0, 0), **kw),      # b2
            ]
            out_specs = pl.BlockSpec((tm, out_dim), lambda i: (i, 0))
            scratch = []
            dims = ("parallel",)
        else:
            grid = (M_p // tm, hid_p // th)
            kernel = _hidden_tiled_kernel
            in_specs = [
                pl.BlockSpec((tm, in_dim), lambda i, k: (i, 0)),         # x (kept across k)
                pl.BlockSpec((in_dim, th), lambda i, k: (0, k)),         # W1 column slab
                pl.BlockSpec((1, th), lambda i, k: (0, k)),              # b1 slab
                pl.BlockSpec((th, out_dim), lambda i, k: (k, 0)),        # W2 row slab
                pl.BlockSpec((1, out_dim), lambda i, k: (0, 0), **kw),   # b2 resident
            ]
            out_specs = pl.BlockSpec((tm, out_dim), lambda i, k: (i, 0))
            scratch = [pltpu.VMEM((tm, out_dim), jnp.float32)]
            dims = ("parallel", "arbitrary")

        return pl.pallas_call(
            kernel,
            out_shape=jax.ShapeDtypeStruct((M_p, out_dim), od),
            grid_spec=pltpu.PrefetchScalarGridSpec(
                num_scalar_prefetch=0,
                grid=grid,
                in_specs=in_specs,
                out_specs=out_specs,
                scratch_shapes=scratch),
            compiler_params=pltpu.CompilerParams(
                dimension_semantics=dims,
                vmem_limit_bytes=vmem_limit),
            cost_estimate=cost,
        )(x2, w1_c, b1_c, w2_c, b2_c)

    try:
        out = _call(single_buffer_weights=True)
    except Exception:
        # Fallback for builds where pipeline_mode=pl.Buffered(1) is rejected.
        out = _call(single_buffer_weights=False)

    if M_p != M:
        out = out[:M]
    return out.reshape(B, L, out_dim)


def init_params(key, in_dim, hidden_dim, out_dim, dtype=jnp.float32):
    # Deterministic synthetic parameters (shapes follow nn.Conv1d(k=1)),
    # stored pre-transposed as (in, out) so the kernel computes x @ W.
    k1, k2, k3, k4 = jax.random.split(key, 4)
    s1 = 1.0 / math.sqrt(in_dim)
    s2 = 1.0 / math.sqrt(hidden_dim)
    w1 = jax.random.uniform(k1, (in_dim, hidden_dim), dtype, -s1, s1)
    b1 = jax.random.uniform(k2, (hidden_dim,), dtype, -s1, s1)
    w2 = jax.random.uniform(k3, (hidden_dim, out_dim), dtype, -s2, s2)
    b2 = jax.random.uniform(k4, (out_dim,), dtype, -s2, s2)
    return w1, b1, w2, b2


if __name__ == "__main__":
    B, L = 2, 8
    in_dim, hidden_dim, out_dim = 32, 64, 16

    key = jax.random.PRNGKey(0)
    kx, kp = jax.random.split(key)
    x = jax.random.normal(kx, (B, L, in_dim), jnp.float32)
    w1, b1, w2, b2 = init_params(kp, in_dim, hidden_dim, out_dim)

    # Dropout(p=0.0) is the identity and is omitted from the kernel.
    y = prediction_forward(x, w1, b1, w2, b2)
    y = jax.block_until_ready(y)

    # Pure-JAX f32 reference; tolerance loosened for bf16 MXU operands.
    h_ref = _gelu_exact(x.reshape(-1, in_dim) @ w1 + b1)
    y_ref = (h_ref @ w2 + b2).reshape(B, L, out_dim)
    assert y.shape == (B, L, out_dim)
    err = float(jnp.max(jnp.abs(y.astype(jnp.float32) - y_ref)))
    assert err < 2e-2, err

    print("KERNEL_OK")
</pallas_src>

<mosaic_0001>
module attributes {stable_mosaic.version = 11 : i64} {
  func.func @_fused_kernel(%arg0: i32, %arg1: memref<16x32xbf16, #tpu.memory_space<vmem>>, %arg2: memref<32x128xbf16, #tpu.memory_space<vmem>>, %arg3: memref<1x128xf32, #tpu.memory_space<vmem>>, %arg4: memref<128x16xbf16, #tpu.memory_space<vmem>>, %arg5: memref<1x16xf32, #tpu.memory_space<vmem>>, %arg6: memref<16x16xf32, #tpu.memory_space<vmem>>) attributes {dimension_semantics = [#tpu.dimension_semantics<parallel>], iteration_bounds = array<i64: 1>, scalar_prefetch = 0 : i64, scratch_operands = 0 : i64, tpu.core_type = #tpu.core_type<tc>, window_params = [{transform_indices = @transform_0, window_bounds = array<i64: 16, 32>}, {pipeline_mode = #tpu.pipeline_mode<synchronous>, transform_indices = @transform_1, window_bounds = array<i64: 32, 128>}, {pipeline_mode = #tpu.pipeline_mode<synchronous>, transform_indices = @transform_2, window_bounds = array<i64: 1, 128>}, {pipeline_mode = #tpu.pipeline_mode<synchronous>, transform_indices = @transform_3, window_bounds = array<i64: 128, 16>}, {pipeline_mode = #tpu.pipeline_mode<synchronous>, transform_indices = @transform_4, window_bounds = array<i64: 1, 16>}, {transform_indices = @transform_5, window_bounds = array<i64: 16, 16>}]} {
    %c0 = arith.constant 0 : index
    %c0_0 = arith.constant 0 : index
    %0 = vector.load %arg1[%c0, %c0_0] : memref<16x32xbf16, #tpu.memory_space<vmem>>, vector<16x32xbf16>
    %c0_1 = arith.constant 0 : index
    %c0_2 = arith.constant 0 : index
    %1 = vector.load %arg2[%c0_1, %c0_2] : memref<32x128xbf16, #tpu.memory_space<vmem>>, vector<32x128xbf16>
    %cst = arith.constant dense<0.000000e+00> : vector<16x128xf32>
    %2 = tpu.matmul %0, %1, %cst {dimension_numbers = #tpu.dot_dimension_numbers<[1], [0], [0], [1], [0, 0, 1, 1], [], []>} : vector<16x32xbf16>, vector<32x128xbf16>, vector<16x128xf32> -> vector<16x128xf32>
    %c0_3 = arith.constant 0 : index
    %c0_4 = arith.constant 0 : index
    %3 = vector.load %arg3[%c0_3, %c0_4] : memref<1x128xf32, #tpu.memory_space<vmem>>, vector<1x128xf32>
    %4 = vector.broadcast %3 : vector<1x128xf32> to vector<16x128xf32>
    %5 = arith.addf %2, %4 : vector<16x128xf32>
    %cst_5 = arith.constant 5.000000e-01 : f32
    %6 = vector.broadcast %cst_5 : f32 to vector<16x128xf32>
    %7 = arith.mulf %6, %5 : vector<16x128xf32>
    %cst_6 = arith.constant 0.707106769 : f32
    %8 = vector.broadcast %cst_6 : f32 to vector<16x128xf32>
    %9 = arith.mulf %5, %8 : vector<16x128xf32>
    %10 = math.erf %9 : vector<16x128xf32>
    %cst_7 = arith.constant 1.000000e+00 : f32
    %11 = vector.broadcast %cst_7 : f32 to vector<16x128xf32>
    %12 = arith.addf %11, %10 : vector<16x128xf32>
    %13 = arith.mulf %7, %12 : vector<16x128xf32>
    %14 = arith.truncf %13 : vector<16x128xf32> to vector<16x128xbf16>
    %c0_8 = arith.constant 0 : index
    %c0_9 = arith.constant 0 : index
    %15 = vector.load %arg4[%c0_8, %c0_9] : memref<128x16xbf16, #tpu.memory_space<vmem>>, vector<128x16xbf16>
    %cst_10 = arith.constant dense<0.000000e+00> : vector<16x16xf32>
    %16 = tpu.matmul %14, %15, %cst_10 {dimension_numbers = #tpu.dot_dimension_numbers<[1], [0], [0], [1], [0, 0, 1, 1], [], []>} : vector<16x128xbf16>, vector<128x16xbf16>, vector<16x16xf32> -> vector<16x16xf32>
    %c0_11 = arith.constant 0 : index
    %c0_12 = arith.constant 0 : index
    %17 = vector.load %arg5[%c0_11, %c0_12] : memref<1x16xf32, #tpu.memory_space<vmem>>, vector<1x16xf32>
    %18 = vector.broadcast %17 : vector<1x16xf32> to vector<16x16xf32>
    %19 = arith.addf %16, %18 : vector<16x16xf32>
    %c0_13 = arith.constant 0 : index
    %c0_14 = arith.constant 0 : index
    %20 = vector.load %arg6[%c0_13, %c0_14] : memref<16x16xf32, #tpu.memory_space<vmem>>, vector<16x16xf32>
    tpu.vector_store %arg6[%c0_13, %c0_14], %19 {strides = array<i32>} : memref<16x16xf32, #tpu.memory_space<vmem>>, vector<16x16xf32>,
    return
  }
  func.func @transform_0(%arg0: i32) -> (i32, i32) {
    %c0_i32 = arith.constant 0 : i32
    %c0_i32_0 = arith.constant 0 : i32
    return %arg0, %c0_i32 : i32, i32
  }
  func.func @transform_1(%arg0: i32) -> (i32, i32) {
    %c0_i32 = arith.constant 0 : i32
    %c0_i32_0 = arith.constant 0 : i32
    %c0_i32_1 = arith.constant 0 : i32
    return %c0_i32, %c0_i32_0 : i32, i32
  }
  func.func @transform_2(%arg0: i32) -> (i32, i32) {
    %c0_i32 = arith.constant 0 : i32
    %c0_i32_0 = arith.constant 0 : i32
    %c0_i32_1 = arith.constant 0 : i32
    return %c0_i32, %c0_i32_0 : i32, i32
  }
  func.func @transform_3(%arg0: i32) -> (i32, i32) {
    %c0_i32 = arith.constant 0 : i32
    %c0_i32_0 = arith.constant 0 : i32
    %c0_i32_1 = arith.constant 0 : i32
    return %c0_i32, %c0_i32_0 : i32, i32
  }
  func.func @transform_4(%arg0: i32) -> (i32, i32) {
    %c0_i32 = arith.constant 0 : i32
    %c0_i32_0 = arith.constant 0 : i32
    %c0_i32_1 = arith.constant 0 : i32
    return %c0_i32, %c0_i32_0 : i32, i32
  }
  func.func @transform_5(%arg0: i32) -> (i32, i32) {
    %c0_i32 = arith.constant 0 : i32
    %c0_i32_0 = arith.constant 0 : i32
    return %arg0, %c0_i32 : i32, i32
  }
}

module attributes {stable_mosaic.version = 11 : i64} {
  func.func @_fused_kernel(%arg0: i32, %arg1: memref<16x32xbf16, #tpu.memory_space<vmem>>, %arg2: memref<32x128xbf16, #tpu.memory_space<vmem>>, %arg3: memref<1x128xf32, #tpu.memory_space<vmem>>, %arg4: memref<128x16xbf16, #tpu.memory_space<vmem>>, %arg5: memref<1x16xf32, #tpu.memory_space<vmem>>, %arg6: memref<16x16xf32, #tpu.memory_space<vmem>>) attributes {dimension_semantics = [#tpu.dimension_semantics<parallel>], iteration_bounds = array<i64: 1>, scalar_prefetch = 0 : i64, scratch_operands = 0 : i64, tpu.core_type = #tpu.core_type<tc>, window_params = [{transform_indices = @transform_0, window_bounds = array<i64: 16, 32>}, {pipeline_mode = #tpu.pipeline_mode<synchronous>, transform_indices = @transform_1, window_bounds = array<i64: 32, 128>}, {pipeline_mode = #tpu.pipeline_mode<synchronous>, transform_indices = @transform_2, window_bounds = array<i64: 1, 128>}, {pipeline_mode = #tpu.pipeline_mode<synchronous>, transform_indices = @transform_3, window_bounds = array<i64: 128, 16>}, {pipeline_mode = #tpu.pipeline_mode<synchronous>, transform_indices = @transform_4, window_bounds = array<i64: 1, 16>}, {transform_indices = @transform_5, window_bounds = array<i64: 16, 16>}]} {
    %c0 = arith.constant 0 : index
    %c0_0 = arith.constant 0 : index
    %0 = vector.load %arg1[%c0, %c0_0] : memref<16x32xbf16, #tpu.memory_space<vmem>>, vector<16x32xbf16>
    %c0_1 = arith.constant 0 : index
    %c0_2 = arith.constant 0 : index
    %1 = vector.load %arg2[%c0_1, %c0_2] : memref<32x128xbf16, #tpu.memory_space<vmem>>, vector<32x128xbf16>
    %cst = arith.constant dense<0.000000e+00> : vector<16x128xf32>
    %2 = tpu.matmul %0, %1, %cst {dimension_numbers = #tpu.dot_dimension_numbers<[1], [0], [0], [1], [0, 0, 1, 1], [], []>} : vector<16x32xbf16>, vector<32x128xbf16>, vector<16x128xf32> -> vector<16x128xf32>
    %c0_3 = arith.constant 0 : index
    %c0_4 = arith.constant 0 : index
    %3 = vector.load %arg3[%c0_3, %c0_4] : memref<1x128xf32, #tpu.memory_space<vmem>>, vector<1x128xf32>
    %4 = vector.broadcast %3 : vector<1x128xf32> to vector<16x128xf32>
    %5 = arith.addf %2, %4 : vector<16x128xf32>
    %cst_5 = arith.constant 5.000000e-01 : f32
    %6 = vector.broadcast %cst_5 : f32 to vector<16x128xf32>
    %7 = arith.mulf %6, %5 : vector<16x128xf32>
    %cst_6 = arith.constant 0.707106769 : f32
    %8 = vector.broadcast %cst_6 : f32 to vector<16x128xf32>
    %9 = arith.mulf %5, %8 : vector<16x128xf32>
    %10 = math.erf %9 : vector<16x128xf32>
    %cst_7 = arith.constant 1.000000e+00 : f32
    %11 = vector.broadcast %cst_7 : f32 to vector<16x128xf32>
    %12 = arith.addf %11, %10 : vector<16x128xf32>
    %13 = arith.mulf %7, %12 : vector<16x128xf32>
    %14 = arith.truncf %13 : vector<16x128xf32> to vector<16x128xbf16>
    %c0_8 = arith.constant 0 : index
    %c0_9 = arith.constant 0 : index
    %15 = vector.load %arg4[%c0_8, %c0_9] : memref<128x16xbf16, #tpu.memory_space<vmem>>, vector<128x16xbf16>
    %cst_10 = arith.constant dense<0.000000e+00> : vector<16x16xf32>
    %16 = tpu.matmul %14, %15, %cst_10 {dimension_numbers = #tpu.dot_dimension_numbers<[1], [0], [0], [1], [0, 0, 1, 1], [], []>} : vector<16x128xbf16>, vector<128x16xbf16>, vector<16x16xf32> -> vector<16x16xf32>
    %c0_11 = arith.constant 0 : index
    %c0_12 = arith.constant 0 : index
    %17 = vector.load %arg5[%c0_11, %c0_12] : memref<1x16xf32, #tpu.memory_space<vmem>>, vector<1x16xf32>
    %18 = vector.broadcast %17 : vector<1x16xf32> to vector<16x16xf32>
    %19 = arith.addf %16, %18 : vector<16x16xf32>
    %c0_13 = arith.constant 0 : index
    %c0_14 = arith.constant 0 : index
    %20 = vector.load %arg6[%c0_13, %c0_14] : memref<16x16xf32, #tpu.memory_space<vmem>>, vector<16x16xf32>
    tpu.vector_store %arg6[%c0_13, %c0_14], %19 {strides = array<i32>} : memref<16x16xf32, #tpu.memory_space<vmem>>, vector<16x16xf32>,
    return
  }
  func.func @transform_0(%arg0: i32) -> (i32, i32) {
    %c0_i32 = arith.constant 0 : i32
    %c0_i32_0 = arith.constant 0 : i32
    return %arg0, %c0_i32 : i32, i32
  }
  func.func @transform_1(%arg0: i32) -> (i32, i32) {
    %c0_i32 = arith.constant 0 : i32
    %c0_i32_0 = arith.constant 0 : i32
    %c0_i32_1 = arith.constant 0 : i32
    return %c0_i32, %c0_i32_0 : i32, i32
  }
  func.func @transform_2(%arg0: i32) -> (i32, i32) {
    %c0_i32 = arith.constant 0 : i32
    %c0_i32_0 = arith.constant 0 : i32
    %c0_i32_1 = arith.constant 0 : i32
    return %c0_i32, %c0_i32_0 : i32, i32
  }
  func.func @transform_3(%arg0: i32) -> (i32, i32) {
    %c0_i32 = arith.constant 0 : i32
    %c0_i32_0 = arith.constant 0 : i32
    %c0_i32_1 = arith.constant 0 : i32
    return %c0_i32, %c0_i32_0 : i32, i32
  }
  func.func @transform_4(%arg0: i32) -> (i32, i32) {
    %c0_i32 = arith.constant 0 : i32
    %c0_i32_0 = arith.constant 0 : i32
    %c0_i32_1 = arith.constant 0 : i32
    return %c0_i32, %c0_i32_0 : i32, i32
  }
  func.func @transform_5(%arg0: i32) -> (i32, i32) {
    %c0_i32 = arith.constant 0 : i32
    %c0_i32_0 = arith.constant 0 : i32
    return %arg0, %c0_i32 : i32, i32
  }
}

</mosaic_0001>

<bundles_post_ra>
// kernel: tpu_custom_call.1
= control target key start
LH: loop header
LB: loop body
LE: loop exit
PB: predicated region body
PF: predicated region fallthrough
CT: control target
= control target key end

     0   :  { %v337_v1 = vmov 0.0   ;;  %vm338_vm0 = vmmov 0   ;;  %vm52_vm1 = vcmask 261120   ;;  %s423_s0 = inlined_call_operand.vmem [shape: bf16[16,32], index: 0, kind: input, shape index: {}]   ;;  %s424_s1 = inlined_call_operand.vmem [shape: bf16[32,128], index: 1, kind: input, shape index: {}]   ;;  %s425_s2 = inlined_call_operand.vmem [shape: f32[1,128], index: 2, kind: input, shape index: {}]   ;;  %s426_s3 = inlined_call_operand.vmem [shape: bf16[128,16], index: 3, kind: input, shape index: {}]   ;;  %s427_s4 = inlined_call_operand.vmem [shape: f32[1,16], index: 4, kind: input, shape index: {}]   ;;  %s428_s5 = inlined_call_operand.hbm [shape: f32[16,16], index: 5, kind: output, shape index: {}]  }
   0x1   :  { %v298_v0 = vld [vmem:[%s424_s1] sm:$0xff]   ;;  %265 = vmatprep.subr.bf16.mxu0 %v337_v1  ;;  %273 = vmatprep.subr.bf16.mxu1 %v337_v1  ;;  %v299_v2 = vld [vmem:[%s424_s1 + $0x8] sm:$0xff]  }
   0x2   :  { %266 = vmatpush3.bf16.msra.mxu0 %v298_v0  ;;  %269 = vmatprep.mubr.msk.bf16.mxu0 %vm338_vm0, %v337_v1  ;;  %v301_v3 = vld [vmem:[%s426_s3] sm:$0xff]   ;;  %v302_v5 = vld [vmem:[%s426_s3 + $0x8] sm:$0xff]  }
   0x3   :  { %267 = vmatprep.subr.bf16.mxu0 %v337_v1  ;;  %289 = vmatprep.mubr.msk.bf16.mxu1 %vm338_vm0, %v337_v1  ;;  %v300_v4 = vld [vmem:[%s423_s0] sm:$0xff]  }
   0x4   :  { %274 = vmatpush3.bf16.msra.mxu1 %v301_v3 }
   0x5   :  { %275 = vmatprep.subr.bf16.mxu1 %v337_v1 }
   0x6   :  { %268 = vmatpush3.bf16.msra.mxu0 %v299_v2 }
   0x8   :  { %276 = vmatpush3.bf16.msra.mxu1 %v302_v5 }
   0x9   :  { %270 = vmatmul.mubr.msk.bf16.vlgmr.msra.gmra.mrb[0].mxu0 %vm52_vm1, %v300_v4 }
   0xa   :  { %10 = vsyncpa [#allocation3], 0  ;;  %277 = vmatprep.subr.bf16.mxu1 %v337_v1  ;;  %v303_v6 = vld [vmem:[%s426_s3 + $0x10] sm:$0xff]   ;;  %v304_v7 = vld [vmem:[%s426_s3 + $0x18] sm:$0xff]   ;;  %s339_s15 = smov [#allocation2]   ;;  %vm220_vm2 = vcmask 130048  }
   0xb   :  { %v305_v8 = vld [vmem:[%s426_s3 + $0x20] sm:$0xff]   ;;  %v306_v9 = vld [vmem:[%s426_s3 + $0x28] sm:$0xff]   ;;  %v307_v10 = vld [vmem:[%s426_s3 + $0x30] sm:$0xff]   ;;  %s228_s16 = sshll.u32 %s339_s15, 4  ;;  %s229_s16 = int_to_ptr.vmem [resolvable:$true] %s228_s16 }
   0xc   :  { %278 = vmatpush3.bf16.msra.mxu1 %v303_v6  ;;  %v308_v11 = vld [vmem:[%s426_s3 + $0x38] sm:$0xff]   ;;  %v239_v12 = vld [vmem:[%s425_s2] ss:$0 sm:$0xff]  ;;  %s313_s17 = scalar_lea.vmem %s229_s16, 256  ;;  %p318_p1 = scmp.lt.s32.totalorder %s229_s16, %s229_s16 }
   0xd   :  { %279 = vmatprep.subr.bf16.mxu1 %v337_v1  ;;  %v244_v30 = vld [vmem:[%s427_s4] ss:$0 sm:$0xff]  ;;  %p314_p0 = scmp.ne.s32.totalorder %s229_s16, %s313_s17  ;;  %p319_p2 = scmp.lt.s32.totalorder %s313_s17, %s313_s17 }
   0xf   :  { %p320_p3 = por %p319_p2, %p318_p1 }
  0x10   :  { %280 = vmatpush3.bf16.msra.mxu1 %v304_v7 }
  0x11   :  { %281 = vmatprep.subr.bf16.mxu1 %v337_v1  ;;  %p321_p4 = pnand %p320_p3, %p314_p0 }
  0x14   :  { %282 = vmatpush3.bf16.msra.mxu1 %v305_v8 }
  0x15   :  { %283 = vmatprep.subr.bf16.mxu1 %v337_v1 }
  0x18   :  { %284 = vmatpush3.bf16.msra.mxu1 %v306_v9 }
  0x19   :  { %285 = vmatprep.subr.bf16.mxu1 %v337_v1 }
  0x1c   :  { %286 = vmatpush3.bf16.msra.mxu1 %v307_v10 }
  0x1d   :  { %287 = vmatprep.subr.bf16.mxu1 %v337_v1 }
  0x20   :  { %288 = vmatpush3.bf16.msra.mxu1 %v308_v11 }
  0xdc   :  { %v90_v13 = vpop.f32.mrb[0].mxu0 }
  0xdd   :  { %v91_v14 = vadd.f32 %v239_v12, %v90_v13  ;;  %v271_v15 = vpop.f32.mrb[1].mxu0 }
  0xde   :  { %v93_v16 = vpop.f32.mrb[2].mxu0 }
  0xdf   :  { %v99_v17 = vmul.f32 0.70710677, %v91_v14  ;;  %v94_v18 = vadd.f32 %v239_v12, %v93_v16  ;;  %v272_v19 = vpop.f32.mrb[3].mxu0  ;;  %v97_v24 = vmul.f32 0.5, %v91_v14 }
  0xe1   :  { %309 = verf.f32 %v99_v17  ;;  %v100_v20 = vmul.f32 0.70710677, %v94_v18  ;;  %v98_v25 = vmul.f32 0.5, %v94_v18 }
  0xe3   :  { %311 = verf.f32 %v100_v20 }
  0xeb   :  { %v310_v21 = vpop.eup %309 }
  0xec   :  { %v103_v22 = vadd.f32 1.0, %v310_v21 }
  0xed   :  { %v312_v23 = vpop.eup %311 }
  0xee   :  { %v104_v26 = vadd.f32 1.0, %v312_v23  ;;  %v105_v27 = vmul.f32 %v103_v22, %v97_v24 }
  0xf0   :  { %v106_v28 = vmul.f32 %v104_v26, %v98_v25 }
  0xf2   :  { %v107_v29 = vpack.c.bf16 %v106_v28, %v105_v27 }
  0xf4   :  { %290 = vmatmul.mubr.bf16.vlgmr.msra.gmra.mrb[0].mxu1 %v107_v29 }
 0x1c7   :  { %v213_v31 = vpop.f32.mrb[0].mxu1 }
 0x1c8   :  { %v214_v32 = vadd.f32 %v244_v30, %v213_v31  ;;  %v291_v33 = vpop.f32.mrb[1].mxu1 }
 0x1c9   :  { %v216_v34 = vpop.f32.mrb[2].mxu1 }
 0x1ca   :  { %221 = vst.msk [vmem:[#allocation2] sm:$0xff] %vm220_vm2, %v214_v32  ;;  %v217_v35 = vadd.f32 %v244_v30, %v216_v34  ;;  %v292_v36 = vpop.f32.mrb[3].mxu1 }
 0x1cc   :  { %222 = vst.msk [vmem:[#allocation2 + $0x8] sm:$0xff] %vm220_vm2, %v217_v35 }
 0x1cd   :  { %324 = shalt.err (!%p321_p4)
}
 0x1ce   :  { %s325_s19 = scalar_lea.hbm %s428_s5, 256 }
 0x1cf   :  { %p326_p5 = scmp.ne.s32.totalorder %s428_s5, %s325_s19  ;;  %p329_p6 = scmp.lt.u32.totalorder %s325_s19, %s428_s5 }
 0x1d1   :  { %p331_p7 = pnand %p329_p6, %p326_p5 }
 0x1d3   :  { %334 = shalt.err (!%p331_p7)
}
 0x1d4   :  { %s340_s24 = smov 128   ;;  %s341_s25 = smov 8  }
 0x1d5   :  { %234 = dma.vmem_to_hbm [thread:$0]  %s229_s16, 256, %s428_s5, [#allocation3], %s340_s24, %s340_s24, %s341_s25  }
 0x1d6   :  { %335 = dma.done.wait [#allocation3], 256  }
 0x1d7   :  { %336 = vsyncadd [#allocation3], 4294967040 }
 0x1d8   :  { %238 = vsyncpa [#allocation3], 1 }

// kernel: tpu_custom_call.1
= control target key start
LH: loop header
LB: loop body
LE: loop exit
PB: predicated region body
PF: predicated region fallthrough
CT: control target
= control target key end

     0   :  { %v337_v1 = vmov 0.0   ;;  %vm338_vm0 = vmmov 0   ;;  %vm52_vm1 = vcmask 261120   ;;  %s423_s0 = inlined_call_operand.vmem [shape: bf16[16,32], index: 0, kind: input, shape index: {}]   ;;  %s424_s1 = inlined_call_operand.vmem [shape: bf16[32,128], index: 1, kind: input, shape index: {}]   ;;  %s425_s2 = inlined_call_operand.vmem [shape: f32[1,128], index: 2, kind: input, shape index: {}]   ;;  %s426_s3 = inlined_call_operand.vmem [shape: bf16[128,16], index: 3, kind: input, shape index: {}]   ;;  %s427_s4 = inlined_call_operand.vmem [shape: f32[1,16], index: 4, kind: input, shape index: {}]   ;;  %s428_s5 = inlined_call_operand.hbm [shape: f32[16,16], index: 5, kind: output, shape index: {}]  }
   0x1   :  { %v298_v0 = vld [vmem:[%s424_s1] sm:$0xff]   ;;  %265 = vmatprep.subr.bf16.mxu0 %v337_v1  ;;  %273 = vmatprep.subr.bf16.mxu1 %v337_v1  ;;  %v299_v2 = vld [vmem:[%s424_s1 + $0x8] sm:$0xff]  }
   0x2   :  { %266 = vmatpush3.bf16.msra.mxu0 %v298_v0  ;;  %269 = vmatprep.mubr.msk.bf16.mxu0 %vm338_vm0, %v337_v1  ;;  %v301_v3 = vld [vmem:[%s426_s3] sm:$0xff]   ;;  %v302_v5 = vld [vmem:[%s426_s3 + $0x8] sm:$0xff]  }
   0x3   :  { %267 = vmatprep.subr.bf16.mxu0 %v337_v1  ;;  %289 = vmatprep.mubr.msk.bf16.mxu1 %vm338_vm0, %v337_v1  ;;  %v300_v4 = vld [vmem:[%s423_s0] sm:$0xff]  }
   0x4   :  { %274 = vmatpush3.bf16.msra.mxu1 %v301_v3 }
   0x5   :  { %275 = vmatprep.subr.bf16.mxu1 %v337_v1 }
   0x6   :  { %268 = vmatpush3.bf16.msra.mxu0 %v299_v2 }
   0x8   :  { %276 = vmatpush3.bf16.msra.mxu1 %v302_v5 }
   0x9   :  { %270 = vmatmul.mubr.msk.bf16.vlgmr.msra.gmra.mrb[0].mxu0 %vm52_vm1, %v300_v4 }
   0xa   :  { %10 = vsyncpa [#allocation3], 0  ;;  %277 = vmatprep.subr.bf16.mxu1 %v337_v1  ;;  %v303_v6 = vld [vmem:[%s426_s3 + $0x10] sm:$0xff]   ;;  %v304_v7 = vld [vmem:[%s426_s3 + $0x18] sm:$0xff]   ;;  %s339_s15 = smov [#allocation2]   ;;  %vm220_vm2 = vcmask 130048  }
   0xb   :  { %v305_v8 = vld [vmem:[%s426_s3 + $0x20] sm:$0xff]   ;;  %v306_v9 = vld [vmem:[%s426_s3 + $0x28] sm:$0xff]   ;;  %v307_v10 = vld [vmem:[%s426_s3 + $0x30] sm:$0xff]   ;;  %s228_s16 = sshll.u32 %s339_s15, 4  ;;  %s229_s16 = int_to_ptr.vmem [resolvable:$true] %s228_s16 }
   0xc   :  { %278 = vmatpush3.bf16.msra.mxu1 %v303_v6  ;;  %v308_v11 = vld [vmem:[%s426_s3 + $0x38] sm:$0xff]   ;;  %v239_v12 = vld [vmem:[%s425_s2] ss:$0 sm:$0xff]  ;;  %s313_s17 = scalar_lea.vmem %s229_s16, 256  ;;  %p318_p1 = scmp.lt.s32.totalorder %s229_s16, %s229_s16 }
   0xd   :  { %279 = vmatprep.subr.bf16.mxu1 %v337_v1  ;;  %v244_v30 = vld [vmem:[%s427_s4] ss:$0 sm:$0xff]  ;;  %p314_p0 = scmp.ne.s32.totalorder %s229_s16, %s313_s17  ;;  %p319_p2 = scmp.lt.s32.totalorder %s313_s17, %s313_s17 }
   0xf   :  { %p320_p3 = por %p319_p2, %p318_p1 }
  0x10   :  { %280 = vmatpush3.bf16.msra.mxu1 %v304_v7 }
  0x11   :  { %281 = vmatprep.subr.bf16.mxu1 %v337_v1  ;;  %p321_p4 = pnand %p320_p3, %p314_p0 }
  0x14   :  { %282 = vmatpush3.bf16.msra.mxu1 %v305_v8 }
  0x15   :  { %283 = vmatprep.subr.bf16.mxu1 %v337_v1 }
  0x18   :  { %284 = vmatpush3.bf16.msra.mxu1 %v306_v9 }
  0x19   :  { %285 = vmatprep.subr.bf16.mxu1 %v337_v1 }
  0x1c   :  { %286 = vmatpush3.bf16.msra.mxu1 %v307_v10 }
  0x1d   :  { %287 = vmatprep.subr.bf16.mxu1 %v337_v1 }
  0x20   :  { %288 = vmatpush3.bf16.msra.mxu1 %v308_v11 }
  0xdc   :  { %v90_v13 = vpop.f32.mrb[0].mxu0 }
  0xdd   :  { %v91_v14 = vadd.f32 %v239_v12, %v90_v13  ;;  %v271_v15 = vpop.f32.mrb[1].mxu0 }
  0xde   :  { %v93_v16 = vpop.f32.mrb[2].mxu0 }
  0xdf   :  { %v99_v17 = vmul.f32 0.70710677, %v91_v14  ;;  %v94_v18 = vadd.f32 %v239_v12, %v93_v16  ;;  %v272_v19 = vpop.f32.mrb[3].mxu0  ;;  %v97_v24 = vmul.f32 0.5, %v91_v14 }
  0xe1   :  { %309 = verf.f32 %v99_v17  ;;  %v100_v20 = vmul.f32 0.70710677, %v94_v18  ;;  %v98_v25 = vmul.f32 0.5, %v94_v18 }
  0xe3   :  { %311 = verf.f32 %v100_v20 }
  0xeb   :  { %v310_v21 = vpop.eup %309 }
  0xec   :  { %v103_v22 = vadd.f32 1.0, %v310_v21 }
  0xed   :  { %v312_v23 = vpop.eup %311 }
  0xee   :  { %v104_v26 = vadd.f32 1.0, %v312_v23  ;;  %v105_v27 = vmul.f32 %v103_v22, %v97_v24 }
  0xf0   :  { %v106_v28 = vmul.f32 %v104_v26, %v98_v25 }
  0xf2   :  { %v107_v29 = vpack.c.bf16 %v106_v28, %v105_v27 }
  0xf4   :  { %290 = vmatmul.mubr.bf16.vlgmr.msra.gmra.mrb[0].mxu1 %v107_v29 }
 0x1c7   :  { %v213_v31 = vpop.f32.mrb[0].mxu1 }
 0x1c8   :  { %v214_v32 = vadd.f32 %v244_v30, %v213_v31  ;;  %v291_v33 = vpop.f32.mrb[1].mxu1 }
 0x1c9   :  { %v216_v34 = vpop.f32.mrb[2].mxu1 }
 0x1ca   :  { %221 = vst.msk [vmem:[#allocation2] sm:$0xff] %vm220_vm2, %v214_v32  ;;  %v217_v35 = vadd.f32 %v244_v30, %v216_v34  ;;  %v292_v36 = vpop.f32.mrb[3].mxu1 }
 0x1cc   :  { %222 = vst.msk [vmem:[#allocation2 + $0x8] sm:$0xff] %vm220_vm2, %v217_v35 }
 0x1cd   :  { %324 = shalt.err (!%p321_p4)
}
 0x1ce   :  { %s325_s19 = scalar_lea.hbm %s428_s5, 256 }
 0x1cf   :  { %p326_p5 = scmp.ne.s32.totalorder %s428_s5, %s325_s19  ;;  %p329_p6 = scmp.lt.u32.totalorder %s325_s19, %s428_s5 }
 0x1d1   :  { %p331_p7 = pnand %p329_p6, %p326_p5 }
 0x1d3   :  { %334 = shalt.err (!%p331_p7)
}
 0x1d4   :  { %s340_s24 = smov 128   ;;  %s341_s25 = smov 8  }
 0x1d5   :  { %234 = dma.vmem_to_hbm [thread:$0]  %s229_s16, 256, %s428_s5, [#allocation3], %s340_s24, %s340_s24, %s341_s25  }
 0x1d6   :  { %335 = dma.done.wait [#allocation3], 256  }
 0x1d7   :  { %336 = vsyncadd [#allocation3], 4294967040 }
 0x1d8   :  { %238 = vsyncpa [#allocation3], 1 }

</bundles_post_ra>
